<compile_context>
chip_gen: v7x
topology: tpu7x:2x2x1
jax: 0.10.0
libtpu: 0.0.40
codegen_flags: <defaults>
</compile_context>

<pallas_src>
import functools
import math

import jax
import jax.numpy as jnp
from jax.experimental import pallas as pl
from jax.experimental.pallas import tpu as pltpu


# ---------------------------------------------------------------------------
# In-kernel matmul helpers: bf16 operands, f32 accumulation on the MXU
# ---------------------------------------------------------------------------
def _mm(a, b):
    """a @ b (contract a's last dim with b's first dim), f32 accumulator."""
    return jax.lax.dot_general(
        a, b, (((1,), (0,)), ((), ())), preferred_element_type=jnp.float32)


def _mm_t(a, b):
    """a @ b.T (contract last dims of both), f32 accumulator."""
    return jax.lax.dot_general(
        a, b, (((1,), (1,)), ((), ())), preferred_element_type=jnp.float32)


def _round_up(x, m):
    return ((x + m - 1) // m) * m


def _default_tile():
    # 256 matches the 256x256 MXU on v6e/v7x; v5e's MXU is 4x128x128 so 128
    # already saturates it and halves the K/V re-read cost on its slower HBM.
    try:
        kind = jax.devices()[0].device_kind.lower()
    except Exception:
        return 256
    if "v5 lite" in kind or "v5e" in kind or "v5litepod" in kind:
        return 128
    return 256


# ---------------------------------------------------------------------------
# Stage 1: fused (LoRA @ in_proj) projection, written head-major to HBM
# ---------------------------------------------------------------------------
def _proj_kernel(x_ref, w_ref, b_ref, o_ref):
    # x_ref: (1, tm, D) bf16  w_ref: (1, D, hd) bf16  b_ref: (1, 1, hd) f32
    # o_ref: (1, 1, tm, hd) bf16 (head-major output)
    o_ref[0, 0] = (_mm(x_ref[0], w_ref[0]) + b_ref[0]).astype(o_ref.dtype)


def _project_heads(x, w_hm, b_hm, tile):
    """(B, S, D) bf16 @ per-head fused weights -> (B, H, S, hd) bf16, one pass."""
    B, S, D = x.shape
    H, _, hd = w_hm.shape
    n_s = S // tile
    flops = 2 * B * S * D * D
    bytes_accessed = (2 * B * S * D            # x read (once per (b, i) tile)
                      + 2 * B * n_s * D * D    # per-head weight slices, per tile
                      + 2 * B * S * D)         # bf16 head-major output
    return pl.pallas_call(
        _proj_kernel,
        out_shape=jax.ShapeDtypeStruct((B, H, S, hd), jnp.bfloat16),
        grid=(B, n_s, H),
        in_specs=[
            pl.BlockSpec((1, tile, D), lambda b, i, h: (b, i, 0)),
            pl.BlockSpec((1, D, hd), lambda b, i, h: (h, 0, 0)),
            pl.BlockSpec((1, 1, hd), lambda b, i, h: (h, 0, 0)),
        ],
        out_specs=pl.BlockSpec((1, 1, tile, hd), lambda b, i, h: (b, h, i, 0)),
        compiler_params=pltpu.CompilerParams(
            dimension_semantics=("parallel", "parallel", "arbitrary"),
            vmem_limit_bytes=32 * 1024 * 1024),
        cost_estimate=pl.CostEstimate(
            flops=int(flops), transcendentals=0,
            bytes_accessed=int(bytes_accessed)),
    )(x, w_hm, b_hm)


# ---------------------------------------------------------------------------
# Stage 2: flash attention (all heads per step) + fused K=D out-projection
# ---------------------------------------------------------------------------
def _attn_kernel(q_ref, k_ref, v_ref, wo_ref, bo_ref, o_ref,
                 m_scr, l_scr, acc_scr,
                 *, num_heads, kv_len, block_k, needs_mask):
    ki = pl.program_id(2)
    nk = pl.num_programs(2)
    bf16 = jnp.bfloat16

    # New q tile: reset the per-head online-softmax state.
    @pl.when(ki == 0)
    def _():
        m_scr[...] = jnp.full(m_scr.shape, -jnp.inf, m_scr.dtype)
        l_scr[...] = jnp.zeros(l_scr.shape, l_scr.dtype)
        acc_scr[...] = jnp.zeros(acc_scr.shape, acc_scr.dtype)

    if needs_mask:
        col = ki * block_k + jax.lax.broadcasted_iota(jnp.int32, (1, block_k), 1)
        kmask = col < kv_len                           # padded keys -> False

    # Unrolled head loop: static indexing into head-major tiles and scratch.
    for h in range(num_heads):
        q = q_ref[0, h]                                # (tq, hd) bf16, pre-scaled
        k = k_ref[0, h]                                # (tk, hd) bf16
        v = v_ref[0, h]                                # (tk, hd) bf16
        s = _mm_t(q, k)                                # (tq, tk) f32
        if needs_mask:
            s = jnp.where(kmask, s, -1e30)
        m_prev = m_scr[h]                              # (tq, 1)
        m_new = jnp.maximum(m_prev, jnp.max(s, axis=-1, keepdims=True))
        alpha = jnp.exp(m_prev - m_new)
        p = jnp.exp(s - m_new)
        l_scr[h] = alpha * l_scr[h] + jnp.sum(p, axis=-1, keepdims=True)
        acc_scr[h] = alpha * acc_scr[h] + _mm(p.astype(bf16), v)
        m_scr[h] = m_new

    # Last kv tile: normalize, concatenate heads along lanes (static offsets),
    # single (tq, D) @ (D, D) out-projection with W_o resident in VMEM, emit.
    @pl.when(ki == nk - 1)
    def _():
        inv_l = pl.reciprocal(l_scr[...], approx=True)     # EUP slot, ~free
        attn = acc_scr[...] * inv_l                        # (H, tq, hd) f32
        cat = jnp.concatenate(
            [attn[h] for h in range(num_heads)], axis=-1).astype(bf16)  # (tq, D)
        o_ref[0] = (_mm(cat, wo_ref[...]) + bo_ref[...]).astype(o_ref.dtype)


# ---------------------------------------------------------------------------
# Wrapper: weight folding, padding, head-major layout, two pallas_call stages
# ---------------------------------------------------------------------------
def lora_mha_pallas(query, key, value, params, num_heads, *, tq=None, tk=None):
    B, Sq, D = query.shape
    Sk = key.shape[1]
    assert key.shape[0] == B and value.shape == key.shape
    assert D % num_heads == 0
    hd = D // num_heads
    f32, bf16 = jnp.float32, jnp.bfloat16
    out_dtype = query.dtype

    if tq is None:
        tq = _default_tile()
    if tk is None:
        tk = _default_tile()
    tq = min(tq, _round_up(Sq, 8))
    tk = min(tk, _round_up(Sk, 8))
    sq_pad = _round_up(Sq, tq)
    sk_pad = _round_up(Sk, tk)
    nq, nk = sq_pad // tq, sk_pad // tk

    # -- fold LoRA pre-projection into the MHA in-projection; fold q scale --
    scale = 1.0 / math.sqrt(hd)
    wq_f = (params["wq"] @ params["wqi"]) * scale
    bq_f = (params["bq"] @ params["wqi"] + params["bqi"]) * scale
    wk_f = params["wk"] @ params["wki"]
    bk_f = params["bk"] @ params["wki"] + params["bki"]
    wv_f = params["wv"] @ params["wvi"]
    bv_f = params["bv"] @ params["wvi"] + params["bvi"]

    def head_major_w(w):   # (D, H*hd) -> (H, D, hd), bf16 MXU operand
        return w.reshape(D, num_heads, hd).transpose(1, 0, 2).astype(bf16)

    def head_major_b(b):   # (1, H*hd) -> (H, 1, hd), f32 (post-accumulate add)
        return b.reshape(1, num_heads, hd).transpose(1, 0, 2).astype(f32)

    wq_r, wk_r, wv_r = map(head_major_w, (wq_f, wk_f, wv_f))
    bq_r, bk_r, bv_r = map(head_major_b, (bq_f, bk_f, bv_f))
    wo = params["wo"].astype(bf16)                # (D, D), kept resident in VMEM
    bo = params["bo"].astype(f32)                 # (1, D)

    def pad_seq(x, s_pad):
        pad = s_pad - x.shape[1]
        if pad:
            x = jnp.pad(x, ((0, 0), (0, pad), (0, 0)))
        return x.astype(bf16)

    q_in = pad_seq(query, sq_pad)
    k_in = pad_seq(key, sk_pad)
    v_in = pad_seq(value, sk_pad)

    # ---- stage 1: project q/k/v once, head-major (B, H, S, hd) bf16 ----
    qh = _project_heads(q_in, wq_r, bq_r, tq)
    kh = _project_heads(k_in, wk_r, bk_r, tk)
    vh = _project_heads(v_in, wv_r, bv_r, tk)

    # ---- stage 2: flash attention + fused out-projection ----
    flops = 4 * B * sq_pad * sk_pad * D + 2 * B * sq_pad * D * D
    transcendentals = B * num_heads * sq_pad * sk_pad
    bytes_accessed = (2 * B * sq_pad * D                 # Q (bf16, once per q tile)
                      + 2 * 2 * B * nq * sk_pad * D      # K,V (bf16, re-read per q tile)
                      + 2 * D * D                        # W_o (bf16, resident)
                      + 4 * B * sq_pad * D)              # output (f32)

    kernel = functools.partial(
        _attn_kernel, num_heads=num_heads, kv_len=Sk, block_k=tk,
        needs_mask=(sk_pad != Sk))

    out = pl.pallas_call(
        kernel,
        out_shape=jax.ShapeDtypeStruct((B, sq_pad, D), out_dtype),
        grid=(B, nq, nk),
        in_specs=[
            pl.BlockSpec((1, num_heads, tq, hd), lambda b, qi, ki: (b, 0, qi, 0)),
            pl.BlockSpec((1, num_heads, tk, hd), lambda b, qi, ki: (b, 0, ki, 0)),
            pl.BlockSpec((1, num_heads, tk, hd), lambda b, qi, ki: (b, 0, ki, 0)),
            pl.BlockSpec((D, D), lambda b, qi, ki: (0, 0)),
            pl.BlockSpec((1, D), lambda b, qi, ki: (0, 0)),
        ],
        out_specs=pl.BlockSpec((1, tq, D), lambda b, qi, ki: (b, qi, 0)),
        scratch_shapes=[
            pltpu.VMEM((num_heads, tq, 1), f32),     # running max
            pltpu.VMEM((num_heads, tq, 1), f32),     # running denominator
            pltpu.VMEM((num_heads, tq, hd), f32),    # per-head attention accumulator
        ],
        compiler_params=pltpu.CompilerParams(
            dimension_semantics=("parallel", "parallel", "arbitrary"),
            vmem_limit_bytes=32 * 1024 * 1024),
        cost_estimate=pl.CostEstimate(
            flops=int(flops), transcendentals=int(transcendentals),
            bytes_accessed=int(bytes_accessed)),
    )(qh, kh, vh, wo, bo)

    return out[:, :Sq, :] if sq_pad != Sq else out


# ---------------------------------------------------------------------------
# Parameter init (PyTorch module shapes; Linear weights stored pre-transposed
# as (in, out) so both kernel and reference compute x @ W).
# ---------------------------------------------------------------------------
def init_params(rng, dim):
    keys = iter(jax.random.split(rng, 20))

    def rnd(shape, scl):
        return jax.random.normal(next(keys), shape, jnp.float32) * scl

    p = {}
    for name in ["wq", "wk", "wv", "wqi", "wki", "wvi", "wo"]:
        p[name] = rnd((dim, dim), 1.0 / math.sqrt(dim))
    for name in ["bq", "bk", "bv", "bqi", "bki", "bvi", "bo"]:
        p[name] = rnd((1, dim), 0.02)
    return p


# ---------------------------------------------------------------------------
# Pure-JAX reference mirroring the PyTorch forward (unfused, f32)
# ---------------------------------------------------------------------------
def reference(query, key, value, p, num_heads):
    B, Sq, D = query.shape
    hd = D // num_heads

    q = query @ p["wq"] + p["bq"]
    k = key @ p["wk"] + p["bk"]
    v = value @ p["wv"] + p["bv"]
    q = q @ p["wqi"] + p["bqi"]
    k = k @ p["wki"] + p["bki"]
    v = v @ p["wvi"] + p["bvi"]

    def split(t):
        S = t.shape[1]
        return t.reshape(B, S, num_heads, hd).transpose(0, 2, 1, 3)

    qh, kh, vh = split(q), split(k), split(v)
    s = (qh @ kh.transpose(0, 1, 3, 2)) / math.sqrt(hd)
    a = jax.nn.softmax(s, axis=-1)
    o = (a @ vh).transpose(0, 2, 1, 3).reshape(B, Sq, D)
    return o @ p["wo"] + p["bo"]


if __name__ == "__main__":
    rng = jax.random.PRNGKey(0)

    def run_case(B, Sq, Sk, D, H):
        kq, kk, kv, kp = jax.random.split(jax.random.fold_in(rng, Sq * 131 + Sk), 4)
        query = jax.random.normal(kq, (B, Sq, D), jnp.float32)
        key_inp = jax.random.normal(kk, (B, Sk, D), jnp.float32)
        value = jax.random.normal(kv, (B, Sk, D), jnp.float32)
        params = init_params(kp, D)

        out = lora_mha_pallas(query, key_inp, value, params, H)
        out = jax.block_until_ready(out)

        ref = reference(query, key_inp, value, params, H)
        assert out.shape == ref.shape
        max_err = float(jnp.max(jnp.abs(out - ref)))
        # bf16 MXU operands + approx reciprocal -> looser tolerance than pure f32
        assert jnp.allclose(out, ref, atol=5e-2, rtol=5e-2), (
            f"mismatch (B={B},Sq={Sq},Sk={Sk},D={D},H={H}) max_err={max_err}")

    run_case(B=2, Sq=16, Sk=16, D=32, H=4)   # tile-aligned path
    run_case(B=2, Sq=20, Sk=12, D=32, H=4)   # ragged path: padded queries + masked keys
    print("KERNEL_OK")
</pallas_src>

<mosaic_0001>
module attributes {stable_mosaic.version = 11 : i64} {
  func.func @_proj_kernel(%arg0: i32, %arg1: i32, %arg2: i32, %arg3: memref<1x16x32xbf16, #tpu.memory_space<vmem>>, %arg4: memref<1x32x8xbf16, #tpu.memory_space<vmem>>, %arg5: memref<1x1x8xf32, #tpu.memory_space<vmem>>, %arg6: memref<1x1x16x8xbf16, #tpu.memory_space<vmem>>) attributes {dimension_semantics = [#tpu.dimension_semantics<parallel>, #tpu.dimension_semantics<parallel>, #tpu.dimension_semantics<arbitrary>], iteration_bounds = array<i64: 2, 1, 4>, scalar_prefetch = 0 : i64, scratch_operands = 0 : i64, tpu.core_type = #tpu.core_type<tc>, window_params = [{transform_indices = @transform_0, window_bounds = array<i64: 1, 16, 32>}, {transform_indices = @transform_1, window_bounds = array<i64: 1, 32, 8>}, {transform_indices = @transform_2, window_bounds = array<i64: 1, 1, 8>}, {transform_indices = @transform_3, window_bounds = array<i64: 1, 1, 16, 8>}]} {
    %c0 = arith.constant 0 : index
    %c0_0 = arith.constant 0 : index
    %c0_1 = arith.constant 0 : index
    %0 = vector.load %arg3[%c0, %c0_0, %c0_1] : memref<1x16x32xbf16, #tpu.memory_space<vmem>>, vector<1x16x32xbf16>
    %1 = vector.shape_cast %0 : vector<1x16x32xbf16> to vector<16x32xbf16>
    %c0_2 = arith.constant 0 : index
    %c0_3 = arith.constant 0 : index
    %c0_4 = arith.constant 0 : index
    %2 = vector.load %arg4[%c0_2, %c0_3, %c0_4] : memref<1x32x8xbf16, #tpu.memory_space<vmem>>, vector<1x32x8xbf16>
    %3 = vector.shape_cast %2 : vector<1x32x8xbf16> to vector<32x8xbf16>
    %cst = arith.constant dense<0.000000e+00> : vector<16x8xf32>
    %4 = tpu.matmul %1, %3, %cst {dimension_numbers = #tpu.dot_dimension_numbers<[1], [0], [0], [1], [0, 0, 1, 1], [], []>} : vector<16x32xbf16>, vector<32x8xbf16>, vector<16x8xf32> -> vector<16x8xf32>
    %c0_5 = arith.constant 0 : index
    %c0_6 = arith.constant 0 : index
    %c0_7 = arith.constant 0 : index
    %5 = vector.load %arg5[%c0_5, %c0_6, %c0_7] : memref<1x1x8xf32, #tpu.memory_space<vmem>>, vector<1x1x8xf32>
    %6 = vector.shape_cast %5 : vector<1x1x8xf32> to vector<1x8xf32>
    %7 = vector.broadcast %6 : vector<1x8xf32> to vector<16x8xf32>
    %8 = arith.addf %4, %7 : vector<16x8xf32>
    %9 = arith.truncf %8 : vector<16x8xf32> to vector<16x8xbf16>
    %c0_8 = arith.constant 0 : index
    %c0_9 = arith.constant 0 : index
    %c0_10 = arith.constant 0 : index
    %c0_11 = arith.constant 0 : index
    %10 = vector.load %arg6[%c0_8, %c0_9, %c0_10, %c0_11] : memref<1x1x16x8xbf16, #tpu.memory_space<vmem>>, vector<1x1x16x8xbf16>
    %11 = vector.shape_cast %10 : vector<1x1x16x8xbf16> to vector<16x8xbf16>
    %12 = vector.shape_cast %9 : vector<16x8xbf16> to vector<1x1x16x8xbf16>
    tpu.vector_store %arg6[%c0_8, %c0_9, %c0_10, %c0_11], %12 {strides = array<i32>} : memref<1x1x16x8xbf16, #tpu.memory_space<vmem>>, vector<1x1x16x8xbf16>,
    return
  }
  func.func @transform_0(%arg0: i32, %arg1: i32, %arg2: i32) -> (i32, i32, i32) {
    %c0_i32 = arith.constant 0 : i32
    %c0_i32_0 = arith.constant 0 : i32
    return %arg0, %arg1, %c0_i32 : i32, i32, i32
  }
  func.func @transform_1(%arg0: i32, %arg1: i32, %arg2: i32) -> (i32, i32, i32) {
    %c0_i32 = arith.constant 0 : i32
    %c0_i32_0 = arith.constant 0 : i32
    %c0_i32_1 = arith.constant 0 : i32
    return %arg2, %c0_i32, %c0_i32_0 : i32, i32, i32
  }
  func.func @transform_2(%arg0: i32, %arg1: i32, %arg2: i32) -> (i32, i32, i32) {
    %c0_i32 = arith.constant 0 : i32
    %c0_i32_0 = arith.constant 0 : i32
    %c0_i32_1 = arith.constant 0 : i32
    return %arg2, %c0_i32, %c0_i32_0 : i32, i32, i32
  }
  func.func @transform_3(%arg0: i32, %arg1: i32, %arg2: i32) -> (i32, i32, i32, i32) {
    %c0_i32 = arith.constant 0 : i32
    %c0_i32_0 = arith.constant 0 : i32
    return %arg0, %arg2, %arg1, %c0_i32 : i32, i32, i32, i32
  }
}

</mosaic_0001>

<bundles_post_ra>
// kernel: tpu_custom_call.1
= control target key start
LH: loop header
LB: loop body
LE: loop exit
PB: predicated region body
PF: predicated region fallthrough
CT: control target
= control target key end

     0   :  { %s621_s12 = smov 0   ;;  %s623_s13 = smov 0   ;;  %s678_s0 = inlined_call_operand.vmem [shape: bf16[2,16,32], index: 0, kind: input, shape index: {}]   ;;  %s679_s1 = inlined_call_operand.vmem [shape: bf16[4,32,8], index: 1, kind: input, shape index: {}]   ;;  %s680_s2 = inlined_call_operand.vmem [shape: f32[4,1,8], index: 2, kind: input, shape index: {}]   ;;  %s681_s3 = inlined_call_operand.vmem [shape: bf16[2,4,16,8], index: 3, kind: output, shape index: {}]  }
   0x1   :  { %s625_s14 = smov 0   ;;  %s627_s15 = smov 0  }
   0x2   :  { %s629_s16 = smov 0  }
   0x3 LB: > { %s25_s17 = sadd.s32 1, %s589_s14  ;;  %s32_s18 = sadd.s32 1, %s593_s15  ;;  %s597_s16 = sphi %s629_s16, %s13_s16   ;;  %s593_s15 = sphi %s627_s15, %s685_s15   ;;  %s589_s14 = sphi %s625_s14, %s684_s14   ;;  %s585_s13 = sphi %s623_s13, %s683_s13   ;;  %s581_s12 = sphi %s621_s12, %s682_s12  }
   0x4   : > { %p26_p0 = scmp.ge.s32.totalorder %s25_s17, 4  ;;  %p482_p1 = scmp.ge.s32.totalorder %s597_s16, 1 }
   0x5   : > { %p185_p2 = scmp.lt.s32.totalorder %s597_s16, 9 }
   0x6   : > { %s687_s17 = smov (%p26_p0, %s25_s17), 0  ;;  %s689_s18 = smov (!%p26_p0, %s32_s18), %s593_s15 }
   0x7   : > { %p186_p3 = pnand %p482_p1, %p185_p2  ;;  %p34_p4 = scmp.ge.s32.totalorder %s689_s18, 2 }
   0x8   : > { %p239_p5 = scmp.lt.s32.totalorder (!%p186_p3), %s581_s12, 3  ;;  %p230_p6 = scmp.lt.s32.totalorder (!%p186_p3), %s585_s13, 1  ;;  %v599_v0 = vmov (!%p186_p3), 0.0   ;;  %vm600_vm0 = vmmov (!%p186_p3), 0   ;;  %vm292_vm1 = vcmask (!%p186_p3), 261120   ;;  %vm345_vm2 = vcmask (!%p186_p3), 60416  }
   0x9   : > { %s691_s18 = smov (%p34_p4, %s689_s18), 0  ;;  %189 = sbr.rel (%p186_p3) target bundleno = 246 (0xf6), region = 32 }
   0xa   : > { %506 = vmatprep.subr.bf16.mxu0 (!%p186_p3), %v599_v0  ;;  %510 = vmatprep.mubr.msk.bf16.mxu0 (!%p186_p3), %vm600_vm0, %v599_v0 }
  0x10   : > { %s693_s12 = smov (!%p239_p5, %s581_s12), 3  ;;  %s695_s13 = smov (!%p230_p6, %s585_s13), 1 }
  0x11   : > { %s500_s19 = sshll.u32 %s693_s12, 4  ;;  %s499_s23 = sshll.u32 %s695_s13, 3 }
  0x12   : > { %s243_s22 = scalar_lea.vmem %s679_s1, %s500_s19  ;;  %s487_s24 = sshll.u32 %s693_s12, 1 }
  0x13   : > { %v556_v1 = vld [vmem:[%s243_s22] sm:$0xff]   ;;  %s237_s27 = scalar_lea.vmem %s678_s0, %s499_s23  ;;  %s257_s28 = sadd.s32 %s499_s23, %s487_s24  ;;  %v557_v2 = vld [vmem:[%s243_s22 + $0x8] sm:$0xff]  }
  0x14   : > { %507 = vmatpush3.bf16.msra.mxu0 %v556_v1  ;;  %v558_v3 = vld [vmem:[%s237_s27] sm:$0xff]   ;;  %s246_s4 = scalar_lea.vmem %s680_s2, %s693_s12  ;;  %s489_s5 = sshll.u32 %s257_s28, 2 }
  0x15   : > { %508 = vmatprep.subr.bf16.mxu0 %v599_v0  ;;  %v490_v4 = vld [vmem:[%s246_s4] ss:$0 sm:$0xff]  ;;  %s259_s8 = scalar_lea.vmem %s681_s3, %s489_s5 }
  0x18   : > { %509 = vmatpush3.bf16.msra.mxu0 %v557_v2 }
  0x1b   : > { %511 = vmatmul.mubr.msk.bf16.vlgmr.msra.gmra.mrb[0].mxu0 %vm292_vm1, %v558_v3 }
  0xee   : > { %v330_v5 = vpop.f32.mrb[0].mxu0 }
  0xef   : > { %v331_v6 = vadd.f32 %v490_v4, %v330_v5  ;;  %v512_v7 = vpop.f32.mrb[1].mxu0 }
  0xf0   : > { %v333_v8 = vpop.f32.mrb[2].mxu0 }
  0xf1   : > { %v501_v9 = vpack.c.bf16 %v331_v6, %v331_v6  ;;  %v334_v10 = vadd.f32 %v490_v4, %v333_v8  ;;  %v513_v11 = vpop.f32.mrb[3].mxu0 }
  0xf3   : > { %346 = vst.msk [vmem:[%s259_s8] sm:$0xf] %vm345_vm2, %v501_v9  ;;  %v502_v12 = vpack.c.bf16 %v334_v10, %v334_v10 }
  0xf5   : > { %347 = vst.msk [vmem:[%s259_s8 + $0x4] sm:$0xf] %vm345_vm2, %v502_v12 }
  0xf6 PF: > { %s13_s16 = sadd.s32 1, %s597_s16   ;;  %s682_s12 = smov %s589_s14 }
  0xf7   : > { %p10_p7 = scmp.ge.s32.totalorder %s13_s16, 10   ;;  %s683_s13 = smov %s593_s15 }
  0xf8   : > { %s684_s14 = smov %s687_s17  ;;  %s685_s15 = smov %s691_s18 }
  0xf9   :  { %12 = sbr.rel (!%p10_p7) target bundleno = 3 (0x3), region = 68 }

</bundles_post_ra>
